<compile_context>
chip_gen: v7x
topology: tpu7x:2x2x1
jax: 0.10.0
libtpu: 0.0.40
codegen_flags: <defaults>
</compile_context>

<pallas_src>
import jax
import jax.numpy as jnp
from jax import lax
from jax.experimental import pallas as pl
from jax.experimental.pallas import tpu as pltpu


_LANE = 128
_SUBLANE = 16  # bf16 sublane packing; also a multiple of the f32 sublane (8).


def _round_up(x, m):
    return ((x + m - 1) // m) * m


def _tpu_limits():
    """Best-effort (tile_budget_bytes, vmem_limit_bytes, num_tensorcores)."""
    vmem_cap = 128 << 20
    num_tc = 1
    try:
        info = pltpu.get_tpu_info()
        vmem_cap = int(getattr(info, "vmem_capacity_bytes", vmem_cap))
        for attr in ("num_cores", "num_tensorcores",
                     "tensorcores_per_chip", "cores_per_chip"):
            v = getattr(info, attr, None)
            if v:
                num_tc = int(v)
                break
    except Exception:
        pass  # query unavailable -> conservative defaults
    # 32 MiB scoped limit is safe on v5e/v6e (128 MiB physical) and v7x
    # (64 MiB physical per TC); clamp if the chip reports less.
    vmem_limit = min(32 << 20, vmem_cap // 2)
    # Tile-sizing budget leaves headroom under the stated limit for compiler
    # temporaries and the double-buffered small streams.
    budget = min(20 << 20, (2 * vmem_limit) // 3)
    return budget, vmem_limit, num_tc


def _plan(batch, hidden_pad, u_cols, d_cols, tile_b=None):
    """Choose fused-vs-gathered path, batch tile, padded batch and grid."""
    budget, vmem_limit, num_tc = _tpu_limits()
    b128 = _round_up(max(batch, 1), _LANE)

    # Fused path VMEM accounting: tables resident (count 2 pipeline buffers),
    # plus per-column: double-buffered id/bias/out streams + bf16 one-hots +
    # f32 gathered tiles + f32 product.
    table_bytes = 2 * 2 * hidden_pad * (u_cols + d_cols)
    fused_per_col = 32 + 2 * (u_cols + d_cols) + 12 * hidden_pad
    use_fused = ((u_cols + d_cols) <= 8192
                 and table_bytes + _LANE * fused_per_col <= budget)

    if tile_b is None:
        if use_fused:
            avail, per_col = budget - table_bytes, fused_per_col
        else:
            # 2 bf16 embedding streams (double-buffered) + f32 upcasts/product.
            avail, per_col = budget, 32 + 20 * hidden_pad
        max_cols = max(_LANE, (avail // per_col) // _LANE * _LANE)
        # TODO(synk): for huge hidden sizes where even 128 columns exceed the
        # budget, add a second "arbitrary" grid axis over H with an f32
        # accumulator scratch (v7x 64 MiB VMEM guard) instead of this floor.
        tile_b = int(min(8192, max_cols, b128))
    else:
        tile_b = _round_up(int(tile_b), _LANE)  # lane-align caller tiles

    # Split across grid steps only when the part reports >= 2 TensorCores
    # (v7x); on single-TC v5e/v6e the extra step is pure per-step overhead.
    if num_tc >= 2 and tile_b > _LANE and b128 // tile_b < num_tc:
        tile_b = max(_LANE, ((b128 // num_tc) // _LANE) * _LANE)

    grid_b = pl.cdiv(max(batch, 1), tile_b)
    b_pad = grid_b * tile_b
    return use_fused, tile_b, b_pad, grid_b, vmem_limit


def _svd_fused_kernel(uid_ref, did_ref, bias_ref, ut_ref, dt_ref, o_ref):
    """Fused gather + score. Everything lane-dense.

    uid_ref/did_ref: [1, TB] int32     bias_ref/o_ref: [1, TB] f32
    ut_ref: [Hp, Up] bf16 (whole user table, VMEM-resident across the grid)
    dt_ref: [Hp, Dp] bf16 (whole doc table)
    """
    u_cols = ut_ref.shape[1]
    d_cols = dt_ref.shape[1]
    tb = uid_ref.shape[1]

    # One-hot selection matrices [num, TB] (at most one 1 per column).
    u_sel = jnp.where(
        lax.broadcasted_iota(jnp.int32, (u_cols, tb), 0) == uid_ref[...],
        1.0, 0.0).astype(ut_ref.dtype)
    d_sel = jnp.where(
        lax.broadcasted_iota(jnp.int32, (d_cols, tb), 0) == did_ref[...],
        1.0, 0.0).astype(dt_ref.dtype)

    # MXU "gather": [Hp, num] @ [num, TB] -> [Hp, TB] f32, already lane-dense.
    u_t = jnp.dot(ut_ref[...], u_sel, preferred_element_type=jnp.float32)
    d_t = jnp.dot(dt_ref[...], d_sel, preferred_element_type=jnp.float32)

    score = jnp.sum(u_t * d_t, axis=0, keepdims=True)  # sublane reduce (XLU)
    o_ref[...] = (score + bias_ref[...]).astype(o_ref.dtype)


def _svd_dot_kernel(u_ref, d_ref, b_ref, o_ref):
    """Fallback: pre-gathered embeddings. u/d: [Hp, TB] bf16, b/o: [1, TB] f32."""
    prod = u_ref[...].astype(jnp.float32) * d_ref[...].astype(jnp.float32)
    score = jnp.sum(prod, axis=0, keepdims=True)        # [1, TB] lane-dense
    o_ref[...] = (score + b_ref[...]).astype(o_ref.dtype)


def _svd_scores_fused(uid, did, bias, u_table_t, d_table_t, *,
                      tile_b, grid_b, vmem_limit):
    hp, u_cols = u_table_t.shape
    _, d_cols = d_table_t.shape
    b_pad = uid.shape[1]

    flops = 2 * hp * (u_cols + d_cols) * b_pad + 2 * hp * b_pad
    bytes_accessed = (2 * 4 * b_pad      # ids
                      + 4 * b_pad        # fused bias
                      + 4 * b_pad        # output
                      + 2 * hp * (u_cols + d_cols))  # tables (fetched once)

    return pl.pallas_call(
        _svd_fused_kernel,
        out_shape=jax.ShapeDtypeStruct((1, b_pad), jnp.float32),
        grid=(grid_b,),
        in_specs=[
            pl.BlockSpec((1, tile_b), lambda i: (0, i)),    # user ids
            pl.BlockSpec((1, tile_b), lambda i: (0, i)),    # doc ids
            pl.BlockSpec((1, tile_b), lambda i: (0, i)),    # fused bias
            pl.BlockSpec((hp, u_cols), lambda i: (0, 0)),   # user table (resident)
            pl.BlockSpec((hp, d_cols), lambda i: (0, 0)),   # doc table (resident)
        ],
        out_specs=pl.BlockSpec((1, tile_b), lambda i: (0, i)),
        compiler_params=pltpu.CompilerParams(
            dimension_semantics=("parallel",),
            vmem_limit_bytes=vmem_limit,
        ),
        cost_estimate=pl.CostEstimate(
            flops=flops, transcendentals=0, bytes_accessed=bytes_accessed),
    )(uid, did, bias, u_table_t, d_table_t)


def _svd_scores_gathered(u_t, d_t, bias, *, tile_b, grid_b, vmem_limit):
    hp, b_pad = u_t.shape
    flops = 2 * hp * b_pad
    bytes_accessed = 2 * 2 * hp * b_pad + 3 * 4 * b_pad

    return pl.pallas_call(
        _svd_dot_kernel,
        out_shape=jax.ShapeDtypeStruct((1, b_pad), jnp.float32),
        grid=(grid_b,),
        in_specs=[
            pl.BlockSpec((hp, tile_b), lambda i: (0, i)),   # user embeddings
            pl.BlockSpec((hp, tile_b), lambda i: (0, i)),   # doc embeddings
            pl.BlockSpec((1, tile_b), lambda i: (0, i)),    # fused bias
        ],
        out_specs=pl.BlockSpec((1, tile_b), lambda i: (0, i)),
        compiler_params=pltpu.CompilerParams(
            dimension_semantics=("parallel",),
            vmem_limit_bytes=vmem_limit,
        ),
        cost_estimate=pl.CostEstimate(
            flops=flops, transcendentals=0, bytes_accessed=bytes_accessed),
    )(u_t, d_t, bias)


class SVDModel:
    """JAX/Pallas re-implementation of the (stub) PyTorch SVDModel.

    forward(user_ids, doc_ids) -> [B] f32:
        score = <user_emb[u], doc_emb[d]> + user_bias[u] + doc_bias[d] + b0
    """

    def __init__(self, user_size, doc_size, hidden_size, key):
        k1, k2, k3, k4 = jax.random.split(key, 4)
        scale = 1.0 / jnp.sqrt(jnp.float32(hidden_size))
        self.user_size = user_size
        self.doc_size = doc_size
        self.hidden_size = hidden_size

        hp = _round_up(hidden_size, _SUBLANE)
        up = _round_up(user_size, _LANE)
        dp = _round_up(doc_size, _LANE)

        # Tables stored transposed [H, num], zero-padded to (sublane, lane)
        # multiples, bf16 (see module header).  Padding is semantically inert:
        # padded H rows are zero, padded id columns are never selected.
        u = jax.random.normal(k1, (hidden_size, user_size), jnp.float32) * scale
        d = jax.random.normal(k2, (hidden_size, doc_size), jnp.float32) * scale
        self.user_emb_t = jnp.pad(
            u, ((0, hp - hidden_size), (0, up - user_size))).astype(jnp.bfloat16)
        self.doc_emb_t = jnp.pad(
            d, ((0, hp - hidden_size), (0, dp - doc_size))).astype(jnp.bfloat16)

        self.user_bias = jax.random.normal(k3, (user_size,), jnp.float32) * 0.01
        self.doc_bias = jax.random.normal(k4, (doc_size,), jnp.float32) * 0.01
        self.global_bias = jnp.float32(0.1)

    def __call__(self, user_ids, doc_ids, *, tile_b=None, force_unfused=False):
        batch = user_ids.shape[0]
        hp, u_cols = self.user_emb_t.shape
        _, d_cols = self.doc_emb_t.shape

        use_fused, tb, b_pad, grid_b, vmem_limit = _plan(
            batch, hp, u_cols, d_cols, tile_b)
        if force_unfused:
            use_fused = False

        # Pad the cheap int32 ids to the tile grid (never pad gathered
        # activations); padded lanes reuse id 0 and are sliced off at the end.
        pad = b_pad - batch
        uid = jnp.pad(user_ids.astype(jnp.int32), (0, pad))
        did = jnp.pad(doc_ids.astype(jnp.int32), (0, pad))

        # Fuse the three bias streams into one lane-dense [1, b_pad] f32 array.
        bias = (jnp.take(self.user_bias, uid)
                + jnp.take(self.doc_bias, did)
                + self.global_bias)[None, :]

        if use_fused:
            out = _svd_scores_fused(
                uid[None, :], did[None, :], bias,
                self.user_emb_t, self.doc_emb_t,
                tile_b=tb, grid_b=grid_b, vmem_limit=vmem_limit)
        else:
            # Tables too large for VMEM residency: gather outside, dot inside.
            # TODO(synk): for very large tables switch to row-major [num, H]
            # storage + in-kernel DMA row gather (PrefetchScalarGridSpec) to
            # also remove this HBM round trip.
            u_t = jnp.take(self.user_emb_t, uid, axis=1)   # [Hp, b_pad] bf16
            d_t = jnp.take(self.doc_emb_t, did, axis=1)
            out = _svd_scores_gathered(
                u_t, d_t, bias, tile_b=tb, grid_b=grid_b, vmem_limit=vmem_limit)
        return out[0, :batch]

    def reference(self, user_ids, doc_ids):
        u_t = jnp.take(self.user_emb_t, user_ids, axis=1).astype(jnp.float32)
        d_t = jnp.take(self.doc_emb_t, doc_ids, axis=1).astype(jnp.float32)
        b = (jnp.take(self.user_bias, user_ids)
             + jnp.take(self.doc_bias, doc_ids)
             + self.global_bias)
        return jnp.sum(u_t * d_t, axis=0) + b


if __name__ == "__main__":
    key = jax.random.PRNGKey(0)
    kp, ku, kd = jax.random.split(key, 3)

    user_size, doc_size, hidden_size = 16, 32, 32
    batch = 16

    model = SVDModel(user_size, doc_size, hidden_size, kp)
    user_ids = jax.random.randint(ku, (batch,), 0, user_size, dtype=jnp.int32)
    doc_ids = jax.random.randint(kd, (batch,), 0, doc_size, dtype=jnp.int32)

    ref = model.reference(user_ids, doc_ids)

    # Fused path: tables resident in VMEM, MXU one-hot gather inside the kernel.
    out_fused = jax.block_until_ready(model(user_ids, doc_ids))
    assert out_fused.shape == (batch,)
    assert jnp.allclose(out_fused, ref, atol=1e-5, rtol=1e-5), (out_fused, ref)

    # Fallback path (pre-gathered embeddings) exercised for coverage.
    out_gathered = jax.block_until_ready(
        model(user_ids, doc_ids, force_unfused=True))
    assert jnp.allclose(out_gathered, ref, atol=1e-5, rtol=1e-5), (out_gathered, ref)

    print("KERNEL_OK")
</pallas_src>

<mosaic_0001>
module attributes {stable_mosaic.version = 11 : i64} {
  func.func @_svd_fused_kernel(%arg0: i32, %arg1: memref<1x128xi32, #tpu.memory_space<vmem>>, %arg2: memref<1x128xi32, #tpu.memory_space<vmem>>, %arg3: memref<1x128xf32, #tpu.memory_space<vmem>>, %arg4: memref<32x128xbf16, #tpu.memory_space<vmem>>, %arg5: memref<32x128xbf16, #tpu.memory_space<vmem>>, %arg6: memref<1x128xf32, #tpu.memory_space<vmem>>) attributes {dimension_semantics = [#tpu.dimension_semantics<parallel>], iteration_bounds = array<i64: 1>, scalar_prefetch = 0 : i64, scratch_operands = 0 : i64, tpu.core_type = #tpu.core_type<tc>, window_params = [{transform_indices = @transform_0, window_bounds = array<i64: 1, 128>}, {transform_indices = @transform_1, window_bounds = array<i64: 1, 128>}, {transform_indices = @transform_2, window_bounds = array<i64: 1, 128>}, {pipeline_mode = #tpu.pipeline_mode<synchronous>, transform_indices = @transform_3, window_bounds = array<i64: 32, 128>}, {pipeline_mode = #tpu.pipeline_mode<synchronous>, transform_indices = @transform_4, window_bounds = array<i64: 32, 128>}, {transform_indices = @transform_5, window_bounds = array<i64: 1, 128>}]} {
    %0 = tpu.iota {dimensions = array<i32: 0>} : vector<128x128xi32>
    %c0 = arith.constant 0 : index
    %c0_0 = arith.constant 0 : index
    %1 = vector.load %arg1[%c0, %c0_0] : memref<1x128xi32, #tpu.memory_space<vmem>>, vector<1x128xi32>
    %2 = vector.broadcast %1 : vector<1x128xi32> to vector<128x128xi32>
    %3 = arith.cmpi eq, %0, %2 : vector<128x128xi32>
    %cst = arith.constant 1.000000e+00 : f32
    %cst_1 = arith.constant 0.000000e+00 : f32
    %4 = vector.broadcast %cst : f32 to vector<128x128xf32>
    %5 = vector.broadcast %cst_1 : f32 to vector<128x128xf32>
    %6 = arith.select %3, %4, %5 : vector<128x128xi1>, vector<128x128xf32>
    %7 = arith.truncf %6 : vector<128x128xf32> to vector<128x128xbf16>
    %8 = tpu.iota {dimensions = array<i32: 0>} : vector<128x128xi32>
    %c0_2 = arith.constant 0 : index
    %c0_3 = arith.constant 0 : index
    %9 = vector.load %arg2[%c0_2, %c0_3] : memref<1x128xi32, #tpu.memory_space<vmem>>, vector<1x128xi32>
    %10 = vector.broadcast %9 : vector<1x128xi32> to vector<128x128xi32>
    %11 = arith.cmpi eq, %8, %10 : vector<128x128xi32>
    %cst_4 = arith.constant 1.000000e+00 : f32
    %cst_5 = arith.constant 0.000000e+00 : f32
    %12 = vector.broadcast %cst_4 : f32 to vector<128x128xf32>
    %13 = vector.broadcast %cst_5 : f32 to vector<128x128xf32>
    %14 = arith.select %11, %12, %13 : vector<128x128xi1>, vector<128x128xf32>
    %15 = arith.truncf %14 : vector<128x128xf32> to vector<128x128xbf16>
    %c0_6 = arith.constant 0 : index
    %c0_7 = arith.constant 0 : index
    %16 = vector.load %arg4[%c0_6, %c0_7] : memref<32x128xbf16, #tpu.memory_space<vmem>>, vector<32x128xbf16>
    %cst_8 = arith.constant dense<0.000000e+00> : vector<32x128xf32>
    %17 = tpu.matmul %16, %7, %cst_8 {dimension_numbers = #tpu.dot_dimension_numbers<[1], [0], [0], [1], [0, 0, 1, 1], [], []>} : vector<32x128xbf16>, vector<128x128xbf16>, vector<32x128xf32> -> vector<32x128xf32>
    %c0_9 = arith.constant 0 : index
    %c0_10 = arith.constant 0 : index
    %18 = vector.load %arg5[%c0_9, %c0_10] : memref<32x128xbf16, #tpu.memory_space<vmem>>, vector<32x128xbf16>
    %cst_11 = arith.constant dense<0.000000e+00> : vector<32x128xf32>
    %19 = tpu.matmul %18, %15, %cst_11 {dimension_numbers = #tpu.dot_dimension_numbers<[1], [0], [0], [1], [0, 0, 1, 1], [], []>} : vector<32x128xbf16>, vector<128x128xbf16>, vector<32x128xf32> -> vector<32x128xf32>
    %20 = arith.mulf %17, %19 : vector<32x128xf32>
    %cst_12 = arith.constant dense<0.000000e+00> : vector<128xf32>
    %21 = vector.multi_reduction <add>, %20, %cst_12 [0] : vector<32x128xf32> to vector<128xf32>
    %22 = vector.shape_cast %21 : vector<128xf32> to vector<1x128xf32>
    %c0_13 = arith.constant 0 : index
    %c0_14 = arith.constant 0 : index
    %23 = vector.load %arg3[%c0_13, %c0_14] : memref<1x128xf32, #tpu.memory_space<vmem>>, vector<1x128xf32>
    %24 = arith.addf %22, %23 : vector<1x128xf32>
    %c0_15 = arith.constant 0 : index
    %c0_16 = arith.constant 0 : index
    %25 = vector.load %arg6[%c0_15, %c0_16] : memref<1x128xf32, #tpu.memory_space<vmem>>, vector<1x128xf32>
    tpu.vector_store %arg6[%c0_15, %c0_16], %24 {strides = array<i32>} : memref<1x128xf32, #tpu.memory_space<vmem>>, vector<1x128xf32>,
    return
  }
  func.func @transform_0(%arg0: i32) -> (i32, i32) {
    %c0_i32 = arith.constant 0 : i32
    %c0_i32_0 = arith.constant 0 : i32
    return %c0_i32, %arg0 : i32, i32
  }
  func.func @transform_1(%arg0: i32) -> (i32, i32) {
    %c0_i32 = arith.constant 0 : i32
    %c0_i32_0 = arith.constant 0 : i32
    return %c0_i32, %arg0 : i32, i32
  }
  func.func @transform_2(%arg0: i32) -> (i32, i32) {
    %c0_i32 = arith.constant 0 : i32
    %c0_i32_0 = arith.constant 0 : i32
    return %c0_i32, %arg0 : i32, i32
  }
  func.func @transform_3(%arg0: i32) -> (i32, i32) {
    %c0_i32 = arith.constant 0 : i32
    %c0_i32_0 = arith.constant 0 : i32
    %c0_i32_1 = arith.constant 0 : i32
    return %c0_i32, %c0_i32_0 : i32, i32
  }
  func.func @transform_4(%arg0: i32) -> (i32, i32) {
    %c0_i32 = arith.constant 0 : i32
    %c0_i32_0 = arith.constant 0 : i32
    %c0_i32_1 = arith.constant 0 : i32
    return %c0_i32, %c0_i32_0 : i32, i32
  }
  func.func @transform_5(%arg0: i32) -> (i32, i32) {
    %c0_i32 = arith.constant 0 : i32
    %c0_i32_0 = arith.constant 0 : i32
    return %c0_i32, %arg0 : i32, i32
  }
}

</mosaic_0001>

<bundles_post_ra>
// kernel: tpu_custom_call.1
= control target key start
LH: loop header
LB: loop body
LE: loop exit
PB: predicated region body
PF: predicated region fallthrough
CT: control target
= control target key end

     0   :  { %10 = vsyncpa [#allocation3], 0  ;;  %s785_s0 = inlined_call_operand.hbm [shape: s32[1,128], index: 0, kind: input, shape index: {}]   ;;  %s786_s1 = inlined_call_operand.vmem [shape: s32[1,128], index: 1, kind: input, shape index: {}]   ;;  %s787_s2 = inlined_call_operand.vmem [shape: f32[1,128], index: 2, kind: input, shape index: {}]   ;;  %s788_s3 = inlined_call_operand.hbm [shape: bf16[32,128], index: 3, kind: input, shape index: {}]   ;;  %s789_s4 = inlined_call_operand.hbm [shape: bf16[32,128], index: 4, kind: input, shape index: {}]   ;;  %s790_s5 = inlined_call_operand.hbm [shape: f32[1,128], index: 5, kind: output, shape index: {}]  }
   0x1   :  { %11 = vsyncpa [#allocation6], 0 }
   0x2   :  { %12 = vsyncpa [#allocation4], 0  ;;  %s533_s18 = smov [#allocation5]   ;;  %s439_s22 = scalar_lea.hbm %s788_s3, 256 }
   0x3   :  { %s32_s19 = sshll.u32 %s533_s18, 4  ;;  %p440_p0 = scmp.ne.s32.totalorder %s788_s3, %s439_s22  ;;  %s33_s19 = int_to_ptr.vmem [resolvable:$true] %s32_s19 }
   0x4   :  { %p443_p1 = scmp.lt.u32.totalorder %s439_s22, %s788_s3 }
   0x6   :  { %p445_p2 = pnand %p443_p1, %p440_p0 }
   0x8   :  { %448 = shalt.err (!%p445_p2)
}
   0x9   :  { %s449_s27 = scalar_lea.vmem %s33_s19, 256  ;;  %p454_p4 = scmp.lt.s32.totalorder %s33_s19, %s33_s19 }
   0xa   :  { %p450_p3 = scmp.ne.s32.totalorder %s33_s19, %s449_s27  ;;  %p455_p5 = scmp.lt.s32.totalorder %s449_s27, %s449_s27 }
   0xc   :  { %p456_p6 = por %p455_p5, %p454_p4 }
   0xe   :  { %p457_p7 = pnand %p456_p6, %p450_p3 }
  0x10   :  { %460 = shalt.err (!%p457_p7)
}
  0x11   :  { %s534_s28 = smov 64   ;;  %s535_s29 = smov 4  }
  0x12   :  { %38 = dma.hbm_to_vmem [thread:$0]  %s788_s3, 256, %s33_s19, [#allocation6], %s534_s28, %s534_s28, %s535_s29  }
  0x13   :  { %s536_s7 = smov [#allocation2]   ;;  %s537_s9 = smov [#allocation7]  }
  0x14   :  { %s19_s8 = sshll.u32 %s536_s7, 4  ;;  %s44_s10 = sshll.u32 %s537_s9, 4  ;;  %s20_s8 = int_to_ptr.vmem [resolvable:$true] %s19_s8  ;;  %s45_s10 = int_to_ptr.vmem [resolvable:$true] %s44_s10 }
  0x15   :  { %s461_s13 = scalar_lea.hbm %s785_s0, 16 }
  0x16   :  { %p462_p8 = scmp.ne.s32.totalorder %s785_s0, %s461_s13  ;;  %p465_p9 = scmp.lt.u32.totalorder %s461_s13, %s785_s0 }
  0x18   :  { %p467_p10 = pnand %p465_p9, %p462_p8 }
  0x1a   :  { %470 = shalt.err (!%p467_p10)
}
  0x1b   :  { %s471_s3 = scalar_lea.vmem %s20_s8, 16  ;;  %s475_s18 = scalar_lea.vmem %s20_s8, 32 }
  0x1c   :  { %p472_p11 = scmp.ne.s32.totalorder %s20_s8, %s471_s3  ;;  %p476_p12 = scmp.lt.s32.totalorder %s20_s8, %s20_s8 }
  0x1d   :  { %p477_p13 = scmp.lt.s32.totalorder %s475_s18, %s471_s3 }
  0x1f   :  { %p478_p0 = por %p477_p13, %p476_p12 }
  0x21   :  { %p479_p1 = pnand %p478_p0, %p472_p11 }
  0x23   :  { %482 = shalt.err (!%p479_p1)
}
  0x24   :  { %22 = dma.hbm_to_vmem [thread:$0]  %s785_s0, 16, %s20_s8, [#allocation3]  }
  0x25   :  { %s483_s23 = scalar_lea.hbm %s789_s4, 256 }
  0x26   :  { %p484_p2 = scmp.ne.s32.totalorder %s789_s4, %s483_s23  ;;  %p487_p3 = scmp.lt.u32.totalorder %s483_s23, %s789_s4 }
  0x28   :  { %p489_p4 = pnand %p487_p3, %p484_p2 }
  0x2a   :  { %492 = shalt.err (!%p489_p4)
}
  0x2b   :  { %s493_s30 = scalar_lea.vmem %s45_s10, 256  ;;  %p498_p6 = scmp.lt.s32.totalorder %s45_s10, %s45_s10 }
  0x2c   :  { %p494_p5 = scmp.ne.s32.totalorder %s45_s10, %s493_s30  ;;  %p499_p7 = scmp.lt.s32.totalorder %s493_s30, %s493_s30 }
  0x2e   :  { %p500_p8 = por %p499_p7, %p498_p6 }
  0x30   :  { %p501_p9 = pnand %p500_p8, %p494_p5 }
  0x32   :  { %504 = shalt.err (!%p501_p9)
}
  0x33   :  { %50 = dma.hbm_to_vmem [thread:$0]  %s789_s4, 256, %s45_s10, [#allocation6], %s534_s28, %s534_s28, %s535_s29  }
  0x34   :  { %527 = dma.done.wait [#allocation3], 16  }
  0x35   :  { %528 = vsyncadd [#allocation3], 4294967280 }
  0x36   :  { %529 = dma.done.wait [#allocation6], 512  }
  0x37   :  { %530 = vsyncadd [#allocation6], 4294966784  ;;  %v61_v0 = vlaneseq  ;;  %v619_v7 = vld [vmem:[#allocation2] ss:$0 sm:$0xff]  ;;  %v538_v9 = vmov 1.0|1.0  }
  0x38   :  { %v624_v8 = vld [vmem:[%s786_s1] ss:$0 sm:$0xff]  ;;  %v435_v12 = vld [vmem:[#allocation5] sm:$0xff]   ;;  %v436_v14 = vld [vmem:[#allocation7] sm:$0xff]   ;;  %s539_s7 = smov [#allocation8]  }
  0x39   :  { %v612_v1 = vshrl.u32 %v61_v0, 7  ;;  %404 = vmatprep.mubr.bf16.mxu0 %v435_v12  ;;  %424 = vmatprep.mubr.bf16.mxu1 %v436_v14  ;;  %v437_v30 = vld [vmem:[#allocation5 + $0x8] sm:$0xff]   ;;  %v438_v31 = vld [vmem:[#allocation7 + $0x8] sm:$0xff]   ;;  %s320_s8 = sshll.u32 %s539_s7, 4  ;;  %s321_s8 = int_to_ptr.vmem [resolvable:$true] %s320_s8 }
  0x3a   :  { %v311_v52 = vld [vmem:[%s787_s2] sm:$0x1]  ;;  %s505_s9 = scalar_lea.vmem %s321_s8, 16  ;;  %s509_s10 = scalar_lea.vmem %s321_s8, 32 }
  0x3b   :  { %v63_v2 = vadd.s32 8, %v612_v1  ;;  %v64_v3 = vadd.s32 16, %v612_v1  ;;  %v65_v4 = vadd.s32 24, %v612_v1  ;;  %v66_v5 = vadd.s32 32, %v612_v1  ;;  %p506_p10 = scmp.ne.s32.totalorder %s321_s8, %s505_s9  ;;  %p510_p11 = scmp.lt.s32.totalorder %s321_s8, %s321_s8 }
  0x3c   :  { %v67_v6 = vadd.s32 40, %v612_v1  ;;  %vm83_vm0 = vcmp.eq.s32.totalorder %v612_v1, %v619_v7  ;;  %vm128_vm2 = vcmp.eq.s32.totalorder %v612_v1, %v624_v8  ;;  %v68_v10 = vadd.s32 48, %v612_v1  ;;  %p511_p12 = scmp.lt.s32.totalorder %s509_s10, %s505_s9 }
  0x3d   :  { %vm84_vm1 = vcmp.eq.s32.totalorder %v63_v2, %v619_v7  ;;  %vm129_vm3 = vcmp.eq.s32.totalorder %v63_v2, %v624_v8  ;;  %vm85_vm5 = vcmp.eq.s32.totalorder %v64_v3, %v619_v7  ;;  %vm86_vm6 = vcmp.eq.s32.totalorder %v65_v4, %v619_v7 }
  0x3e   :  { %vm334_vm4 = vmpackc.low %vm84_vm1, %vm83_vm0  ;;  %vm130_vm7 = vcmp.eq.s32.totalorder %v64_v3, %v624_v8  ;;  %vm131_vm8 = vcmp.eq.s32.totalorder %v65_v4, %v624_v8  ;;  %vm87_vm10 = vcmp.eq.s32.totalorder %v66_v5, %v619_v7  ;;  %vm88_vm11 = vcmp.eq.s32.totalorder %v67_v6, %v619_v7  ;;  %p512_p13 = por %p511_p12, %p510_p11 }
  0x3f   :  { %388 = vmatprep.subr.msk.bf16.mxu0 %vm334_vm4, %v538_v9  ;;  %vm352_vm9 = vmpackc.low %vm129_vm3, %vm128_vm2  ;;  %v69_v11 = vadd.s32 56, %v612_v1  ;;  %vm132_vm13 = vcmp.eq.s32.totalorder %v66_v5, %v624_v8  ;;  %vm133_vm14 = vcmp.eq.s32.totalorder %v67_v6, %v624_v8  ;;  %vm89_vm2 = vcmp.eq.s32.totalorder %v68_v10, %v619_v7 }
  0x40   :  { %408 = vmatprep.subr.msk.bf16.mxu1 %vm352_vm9, %v538_v9  ;;  %389 = vmatpush3.bf16.msk.msra.mxu0 %vm334_vm4, %v538_v9  ;;  %vm336_vm12 = vmpackc.low %vm86_vm6, %vm85_vm5  ;;  %v70_v16 = vadd.s32 64, %v612_v1  ;;  %v71_v17 = vadd.s32 72, %v612_v1  ;;  %vm134_vm4 = vcmp.eq.s32.totalorder %v68_v10, %v624_v8  ;;  %v72_v20 = vadd.s32 80, %v612_v1  ;;  %p513_p0 = pnand %p512_p13, %p506_p10 }
  0x41   :  { %409 = vmatpush3.bf16.msk.msra.mxu1 %vm352_vm9, %v538_v9  ;;  %390 = vmatprep.subr.msk.bf16.mxu0 %vm336_vm12, %v538_v9  ;;  %vm354_vm15 = vmpackc.low %vm131_vm8, %vm130_vm7  ;;  %vm90_vm3 = vcmp.eq.s32.totalorder %v69_v11, %v619_v7  ;;  %vm135_vm5 = vcmp.eq.s32.totalorder %v69_v11, %v624_v8  ;;  %v73_v21 = vadd.s32 88, %v612_v1  ;;  %v74_v24 = vadd.s32 96, %v612_v1 }
  0x42   :  { %410 = vmatprep.subr.msk.bf16.mxu1 %vm354_vm15, %v538_v9  ;;  %vm652_vm0 = vmpackc.low %vm88_vm11, %vm87_vm10  ;;  %vm91_vm8 = vcmp.eq.s32.totalorder %v70_v16, %v619_v7  ;;  %vm92_vm9 = vcmp.eq.s32.totalorder %v71_v17, %v619_v7  ;;  %vm136_vm10 = vcmp.eq.s32.totalorder %v70_v16, %v624_v8  ;;  %vm137_vm11 = vcmp.eq.s32.totalorder %v71_v17, %v624_v8 }
  0x43   :  { %vm656_vm1 = vmpackc.low %vm133_vm14, %vm132_vm13  ;;  %vm93_vm14 = vcmp.eq.s32.totalorder %v72_v20, %v619_v7  ;;  %v75_v25 = vadd.s32 104, %v612_v1  ;;  %v76_v28 = vadd.s32 112, %v612_v1  ;;  %v77_v29 = vadd.s32 120, %v612_v1 }
  0x44   :  { %391 = vmatpush3.bf16.msk.msra.mxu0 %vm336_vm12, %v538_v9  ;;  %vm674_vm6 = vmpackc.low %vm90_vm3, %vm89_vm2 }
  0x45   :  { %411 = vmatpush3.bf16.msk.msra.mxu1 %vm354_vm15, %v538_v9  ;;  %392 = vmatprep.subr.msk.bf16.mxu0 %vm652_vm0, %v538_v9  ;;  %vm678_vm7 = vmpackc.low %vm135_vm5, %vm134_vm4  ;;  %vm94_vm15 = vcmp.eq.s32.totalorder %v73_v21, %v619_v7  ;;  %vm95_vm4 = vcmp.eq.s32.totalorder %v74_v24, %v619_v7  ;;  %vm96_vm5 = vcmp.eq.s32.totalorder %v75_v25, %v619_v7 }
  0x46   :  { %412 = vmatprep.subr.msk.bf16.mxu1 %vm656_vm1, %v538_v9  ;;  %vm700_vm12 = vmpackc.low %vm92_vm9, %vm91_vm8 }
  0x47   :  { %vm704_vm13 = vmpackc.low %vm137_vm11, %vm136_vm10  ;;  %vm97_vm10 = vcmp.eq.s32.totalorder %v76_v28, %v619_v7  ;;  %vm98_vm11 = vcmp.eq.s32.totalorder %v77_v29, %v619_v7 }
  0x48   :  { %393 = vmatpush3.bf16.msk.msra.mxu0 %vm652_vm0, %v538_v9  ;;  %vm138_vm0 = vcmp.eq.s32.totalorder %v72_v20, %v624_v8  ;;  %vm726_vm2 = vmpackc.low %vm94_vm15, %vm93_vm14 }
  0x49   :  { %413 = vmatpush3.bf16.msk.msra.mxu1 %vm656_vm1, %v538_v9  ;;  %394 = vmatprep.subr.msk.bf16.mxu0 %vm674_vm6, %v538_v9  ;;  %vm139_vm1 = vcmp.eq.s32.totalorder %v73_v21, %v624_v8  ;;  %vm346_vm8 = vmpackc.low %vm96_vm5, %vm95_vm4 }
  0x4a   :  { %414 = vmatprep.subr.msk.bf16.mxu1 %vm678_vm7, %v538_v9  ;;  %vm730_vm3 = vmpackc.low %vm139_vm1, %vm138_vm0 }
  0x4b   :  { %vm348_vm14 = vmpackc.low %vm98_vm11, %vm97_vm10 }
  0x4c   :  { %395 = vmatpush3.bf16.msk.msra.mxu0 %vm674_vm6, %v538_v9  ;;  %vm140_vm6 = vcmp.eq.s32.totalorder %v74_v24, %v624_v8 }
  0x4d   :  { %415 = vmatpush3.bf16.msk.msra.mxu1 %vm678_vm7, %v538_v9  ;;  %396 = vmatprep.subr.msk.bf16.mxu0 %vm700_vm12, %v538_v9  ;;  %vm141_vm7 = vcmp.eq.s32.totalorder %v75_v25, %v624_v8 }
  0x4e   :  { %416 = vmatprep.subr.msk.bf16.mxu1 %vm704_vm13, %v538_v9  ;;  %vm364_vm9 = vmpackc.low %vm141_vm7, %vm140_vm6 }
  0x50   :  { %397 = vmatpush3.bf16.msk.msra.mxu0 %vm700_vm12, %v538_v9  ;;  %vm142_vm12 = vcmp.eq.s32.totalorder %v76_v28, %v624_v8 }
  0x51   :  { %417 = vmatpush3.bf16.msk.msra.mxu1 %vm704_vm13, %v538_v9  ;;  %398 = vmatprep.subr.msk.bf16.mxu0 %vm726_vm2, %v538_v9  ;;  %vm143_vm13 = vcmp.eq.s32.totalorder %v77_v29, %v624_v8 }
  0x52   :  { %418 = vmatprep.subr.msk.bf16.mxu1 %vm730_vm3, %v538_v9  ;;  %vm366_vm15 = vmpackc.low %vm143_vm13, %vm142_vm12 }
  0x54   :  { %399 = vmatpush3.bf16.msk.msra.mxu0 %vm726_vm2, %v538_v9 }
  0x55   :  { %419 = vmatpush3.bf16.msk.msra.mxu1 %vm730_vm3, %v538_v9  ;;  %400 = vmatprep.subr.msk.bf16.mxu0 %vm346_vm8, %v538_v9 }
  0x56   :  { %420 = vmatprep.subr.msk.bf16.mxu1 %vm364_vm9, %v538_v9 }
  0x58   :  { %401 = vmatpush3.bf16.msk.msra.mxu0 %vm346_vm8, %v538_v9 }
  0x59   :  { %421 = vmatpush3.bf16.msk.msra.mxu1 %vm364_vm9, %v538_v9  ;;  %402 = vmatprep.subr.msk.bf16.mxu0 %vm348_vm14, %v538_v9 }
  0x5a   :  { %422 = vmatprep.subr.msk.bf16.mxu1 %vm366_vm15, %v538_v9 }
  0x5c   :  { %403 = vmatpush3.bf16.msk.msra.mxu0 %vm348_vm14, %v538_v9 }
  0x5d   :  { %423 = vmatpush3.bf16.msk.msra.mxu1 %vm366_vm15, %v538_v9 }
  0x5f   :  { %405 = vmatmul.mubr.bf16.vlgmr.msra.gmra.mrb[0].mxu0 %v437_v30 }
  0x60   :  { %425 = vmatmul.mubr.bf16.vlgmr.msra.gmra.mrb[0].mxu1 %v438_v31 }
 0x132   :  { %v406_v32 = vpop.f32.mrb[0].mxu0 }
 0x133   :  { %v426_v33 = vpop.f32.mrb[0].mxu1  ;;  %v218_v34 = vpop.f32.mrb[1].mxu0 }
 0x134   :  { %v300_v35 = vmul.f32 %v426_v33, %v406_v32  ;;  %v283_v36 = vpop.f32.mrb[1].mxu1  ;;  %v407_v37 = vpop.f32.mrb[2].mxu0 }
 0x135   :  { %v298_v38 = vmul.f32 %v283_v36, %v218_v34  ;;  %v427_v39 = vpop.f32.mrb[2].mxu1  ;;  %v221_v40 = vpop.f32.mrb[3].mxu0 }
 0x136   :  { %v301_v41 = vmul.f32 %v427_v39, %v407_v37  ;;  %v286_v42 = vpop.f32.mrb[3].mxu1 }
 0x137   :  { %v299_v43 = vmul.f32 %v286_v42, %v221_v40 }
 0x139   :  { %v302_v44 = vadd.f32 %v299_v43, %v298_v38 }
 0x13b   :  { %v303_v45 = vadd.f32 %v302_v44, %v300_v35 }
 0x13d   :  { %v304_v46 = vadd.f32 %v303_v45, %v301_v41 }
 0x13f   :  { %v305_v47 = vrot.slane %v304_v46, 4 }
 0x141   :  { %v306_v48 = vadd.f32 %v305_v47, %v304_v46 }
 0x143   :  { %v307_v49 = vrot.slane %v306_v48, 2 }
 0x145   :  { %v308_v50 = vadd.f32 %v307_v49, %v306_v48 }
 0x147   :  { %v309_v51 = vrot.slane %v308_v50, 1 }
 0x149   :  { %v310_v53 = vadd.f32 %v309_v51, %v308_v50 }
 0x14b   :  { %v312_v54 = vadd.f32 %v311_v52, %v310_v53 }
 0x14d   :  { %313 = vst [vmem:[#allocation8] sm:$0x1] %v312_v54 }
 0x14e   :  { %516 = shalt.err (!%p513_p0)
}
 0x14f   :  { %s517_s13 = scalar_lea.hbm %s790_s5, 16 }
 0x150   :  { %p518_p1 = scmp.ne.s32.totalorder %s790_s5, %s517_s13  ;;  %p521_p2 = scmp.lt.u32.totalorder %s517_s13, %s790_s5 }
 0x152   :  { %p523_p3 = pnand %p521_p2, %p518_p1 }
 0x154   :  { %526 = shalt.err (!%p523_p3)
}
 0x155   :  { %323 = dma.vmem_to_hbm [thread:$0]  %s321_s8, 16, %s790_s5, [#allocation4]  }
 0x156   :  { %531 = dma.done.wait [#allocation4], 16  }
 0x157   :  { %532 = vsyncadd [#allocation4], 4294967280 }
 0x158   :  { %327 = vsyncpa [#allocation3], 1 }
 0x159   :  { %328 = vsyncpa [#allocation6], 1 }
 0x15a   :  { %329 = vsyncpa [#allocation4], 1 }

</bundles_post_ra>
